<compile_context>
chip_gen: v5e
topology: v5e:2x2
jax: 0.10.0
libtpu: 0.0.40
codegen_flags: <defaults>
</compile_context>

<pallas_src>
import functools

import jax
import jax.numpy as jnp
import numpy as np
from jax.experimental import pallas as pl
from jax.experimental.pallas import tpu as pltpu

BN_EPS = 1e-5


# ------------------------------ fused kernel -------------------------------- #

def _resblock_kernel(x_ref, wk1e_ref, wk1m_ref, wk2_ref, agg_ref, bn_ref, o_ref, *,
                     n, h, w, cin, cout, eps, use_projection, mxu_dtype):
    nh = n * h
    lout = w * cout
    inv_m = 1.0 / float(n * h * w)
    f32 = jnp.float32

    agg = agg_ref[...]            # (lout, lout) 0/1 same-channel aggregation matrix
    bn = bn_ref[...]              # lane-tiled gamma/beta rows

    # Rows that a +/-1 row shift drags across an image boundary must be zeroed;
    # they play the role of the conv's zero padding along H.
    row_in_img = jax.lax.broadcasted_iota(jnp.int32, (nh, 1), 0) % h
    not_first = row_in_img != 0
    not_last = row_in_img != (h - 1)

    def shift_rows(y):
        # y: (nh, L) f32.  dn[r] = y[r-1] (zero at the top row of each image),
        #                  up[r] = y[r+1] (zero at the bottom row of each image).
        z = jnp.zeros((1, y.shape[1]), y.dtype)
        dn = jnp.where(not_first, jnp.concatenate([z, y[:-1]], axis=0), 0.0)
        up = jnp.where(not_last, jnp.concatenate([y[1:], z], axis=0), 0.0)
        # TODO(synk): pltpu.roll(axis=0) would keep these shifts on the idle XLU slot.
        return dn, up

    def batch_norm(y, g_l, b_l, relu):
        # Training-mode batch stats over (N, H, W), biased variance.  Row-reduce
        # first (cheap VPU/XLU), then one (1,L)x(L,L) dot sums the W lanes that
        # belong to the same channel and broadcasts the stat back per lane.
        mean_l = jnp.dot(jnp.sum(y, axis=0, keepdims=True), agg,
                         preferred_element_type=f32) * inv_m
        d = y - mean_l
        var_l = jnp.dot(jnp.sum(d * d, axis=0, keepdims=True), agg,
                        preferred_element_type=f32) * inv_m
        z = d * (g_l * jax.lax.rsqrt(var_l + eps)) + b_l          # folded scale/shift
        return jnp.maximum(z, 0.0) if relu else z

    def conv3x3(y, w_mid, w_dn, w_up, extra_cols):
        # 3x3 "same" conv on the (nh, W*C) row slab = 3 banded matmuls (one per ky).
        dn, up = shift_rows(y)
        mid = jnp.dot(y.astype(mxu_dtype), w_mid, preferred_element_type=f32)
        acc = mid[:, :lout]
        acc = acc + jnp.dot(dn.astype(mxu_dtype), w_dn, preferred_element_type=f32)
        acc = acc + jnp.dot(up.astype(mxu_dtype), w_up, preferred_element_type=f32)
        return acc, (mid[:, lout:] if extra_cols else None)

    x = x_ref[...].astype(f32)                       # (nh, w*cin) row-slab layout

    # ---- conv1 (3x3 same) with the 1x1 projection fused into the ky=1 matmul ----
    h1, proj = conv3x3(x, wk1m_ref[...], wk1e_ref[0], wk1e_ref[1],
                       extra_cols=use_projection)
    if use_projection:
        s = batch_norm(proj, bn[4:5], bn[5:6], relu=False)
    else:
        s = x                                        # identity shortcut (cin == cout)
    h1 = batch_norm(h1, bn[0:1], bn[1:2], relu=True)

    # ---- conv2 (3x3 same) + BN + ReLU -------------------------------------------
    h2, _ = conv3x3(h1, wk2_ref[1], wk2_ref[0], wk2_ref[2], extra_cols=False)
    h2 = batch_norm(h2, bn[2:3], bn[3:4], relu=True)

    # ---- residual add + ReLU, lane-dense store -----------------------------------
    o_ref[...] = jnp.maximum(h2 + s, 0.0).astype(o_ref.dtype)


# -------------------------- host-side weight plumbing ----------------------- #

def _banded_conv_weights(w_hwio, width):
    """HWIO (3,3,ci,co) conv weight -> clipped-band weights (3, width*ci, width*co)
    so a 3x3 'same' conv becomes 3 slab matmuls over the UNPADDED width (edge taps
    that would read outside [0, width) are dropped — identical to zero padding)."""
    kh, kw, ci, co = w_hwio.shape
    wi = np.arange(width)[:, None]                 # input column
    wo = np.arange(width)[None, :]                 # output column
    kx = wi - wo + kw // 2                         # tap index s.t. wi = wo + kx - pad
    valid = jnp.asarray((kx >= 0) & (kx < kw), jnp.float32)
    kx_c = np.clip(kx, 0, kw - 1)
    band = w_hwio.astype(jnp.float32)[:, kx_c, :, :]       # (kh, wi, wo, ci, co)
    band = band * valid[None, :, :, None, None]
    band = jnp.transpose(band, (0, 1, 3, 2, 4))            # (kh, wi, ci, wo, co)
    return band.reshape(kh, width * ci, width * co)


def _blockdiag_1x1_weights(pw, width):
    """1x1 conv (ci, co) -> block-diagonal (width*ci, width*co) slab matmul weight."""
    ci, co = pw.shape
    eye = jnp.eye(width, dtype=jnp.float32)
    return jnp.einsum("wv,cd->wcvd", eye,
                      pw.astype(jnp.float32)).reshape(width * ci, width * co)


def _channel_agg_matrix(width, co):
    """(width*co, width*co) 0/1 matrix summing lanes belonging to the same channel."""
    l = np.arange(width * co)
    return jnp.asarray((l[:, None] % co == l[None, :] % co).astype(np.float32))


def _lane_tiled(v, width):
    """Per-channel vector (co,) -> lane-tiled row (1, width*co)."""
    return jnp.tile(v.astype(jnp.float32), width).reshape(1, -1)


# --------------------------- ResidualBlock forward --------------------------- #

def residual_block_forward(x_nchw, params, *, use_projection=True,
                           mxu_dtype=jnp.bfloat16):
    n, cin, h, w = x_nchw.shape
    cout = params["w1"].shape[-1]
    if not use_projection:
        assert cin == cout, "identity shortcut requires in_channels == filters"

    nh, k1, k2, lout = n * h, w * cin, w * cout, w * cout

    # NCHW -> lane-dense row slab (N*H, W*C): one image row = W*C contiguous lanes.
    x2 = jnp.transpose(x_nchw, (0, 2, 3, 1)).reshape(nh, k1)

    wk1 = _banded_conv_weights(params["w1"], w)                  # (3, k1, lout) f32
    wk2 = _banded_conv_weights(params["w2"], w).astype(mxu_dtype)
    wk1_edge = jnp.stack([wk1[0], wk1[2]]).astype(mxu_dtype)     # ky = 0 and ky = 2
    wk1_mid = wk1[1]
    if use_projection:
        # Fuse the 1x1 projection as extra output columns of the ky=1 matmul.
        wk1_mid = jnp.concatenate(
            [wk1_mid, _blockdiag_1x1_weights(params["proj_w"], w)], axis=1)
    wk1_mid = wk1_mid.astype(mxu_dtype)

    agg = _channel_agg_matrix(w, cout)

    bn_rows = [_lane_tiled(params["gamma1"], w), _lane_tiled(params["beta1"], w),
               _lane_tiled(params["gamma2"], w), _lane_tiled(params["beta2"], w)]
    if use_projection:
        bn_rows += [_lane_tiled(params["proj_gamma"], w),
                    _lane_tiled(params["proj_beta"], w)]
    bn = jnp.concatenate(bn_rows, axis=0)

    inputs = [x2, wk1_edge, wk1_mid, wk2, agg, bn]

    mid_cols = wk1_mid.shape[-1]
    flops = (2 * nh * (k1 * (mid_cols + 2 * lout) + 3 * k2 * lout)
             + len(bn_rows) * 2 * lout * lout)
    bytes_accessed = (sum(int(np.prod(a.shape)) * a.dtype.itemsize for a in inputs)
                      + nh * lout * x_nchw.dtype.itemsize)

    kernel = functools.partial(
        _resblock_kernel, n=n, h=h, w=w, cin=cin, cout=cout, eps=BN_EPS,
        use_projection=use_projection, mxu_dtype=mxu_dtype)

    out2 = pl.pallas_call(
        kernel,
        out_shape=jax.ShapeDtypeStruct((nh, lout), x_nchw.dtype),
        cost_estimate=pl.CostEstimate(flops=int(flops),
                                      transcendentals=3 * lout,
                                      bytes_accessed=int(bytes_accessed)),
        compiler_params=pltpu.CompilerParams(vmem_limit_bytes=32 * 1024 * 1024),
    )(*inputs)

    return jnp.transpose(out2.reshape(n, h, w, cout), (0, 3, 1, 2))  # NHWC -> NCHW


# ---------------------------------- reference -------------------------------- #

def _ref_bn(x, gamma, beta, relu):
    mean = jnp.mean(x, axis=(0, 1, 2), keepdims=True)
    var = jnp.mean(jnp.square(x - mean), axis=(0, 1, 2), keepdims=True)
    y = (x - mean) * jax.lax.rsqrt(var + BN_EPS) * gamma + beta
    return jnp.maximum(y, 0.0) if relu else y


def reference_forward(x_nchw, params, *, use_projection=True):
    x = jnp.transpose(x_nchw, (0, 2, 3, 1))
    dn = jax.lax.conv_dimension_numbers(x.shape, params["w1"].shape,
                                        ("NHWC", "HWIO", "NHWC"))
    conv = functools.partial(jax.lax.conv_general_dilated,
                             window_strides=(1, 1), padding="SAME",
                             dimension_numbers=dn,
                             precision=jax.lax.Precision.HIGHEST)
    shortcut = x
    if use_projection:
        s = conv(x, params["proj_w"][None, None])
        shortcut = _ref_bn(s, params["proj_gamma"], params["proj_beta"], False)
    hh = conv(x, params["w1"])
    hh = _ref_bn(hh, params["gamma1"], params["beta1"], True)
    hh = conv(hh, params["w2"])
    hh = _ref_bn(hh, params["gamma2"], params["beta2"], True)
    out = jnp.maximum(hh + shortcut, 0.0)
    return jnp.transpose(out, (0, 3, 1, 2))


# ------------------------------------ main ------------------------------------ #

if __name__ == "__main__":
    N, IN_CH, FILTERS, H, W = 2, 4, 8, 16, 16

    key = jax.random.PRNGKey(0)
    kx, kw1, kw2, kwp = jax.random.split(key, 4)

    x = jax.random.normal(kx, (N, IN_CH, H, W), jnp.float32)   # PyTorch NCHW input

    params = {
        # conv weights stored HWIO (PyTorch OIHW transposed)
        "w1": jax.random.normal(kw1, (3, 3, IN_CH, FILTERS), jnp.float32)
              * (1.0 / np.sqrt(9 * IN_CH)),
        "w2": jax.random.normal(kw2, (3, 3, FILTERS, FILTERS), jnp.float32)
              * (1.0 / np.sqrt(9 * FILTERS)),
        "proj_w": jax.random.normal(kwp, (IN_CH, FILTERS), jnp.float32)
                  * (1.0 / np.sqrt(IN_CH)),
        # BatchNorm affine params (PyTorch defaults: gamma=1, beta=0)
        "gamma1": jnp.ones((FILTERS,), jnp.float32),
        "beta1": jnp.zeros((FILTERS,), jnp.float32),
        "gamma2": jnp.ones((FILTERS,), jnp.float32),
        "beta2": jnp.zeros((FILTERS,), jnp.float32),
        "proj_gamma": jnp.ones((FILTERS,), jnp.float32),
        "proj_beta": jnp.zeros((FILTERS,), jnp.float32),
    }

    ref = jax.block_until_ready(reference_forward(x, params, use_projection=True))

    # f32-MXU path: tight check against the HIGHEST-precision XLA reference.
    out_f32 = jax.block_until_ready(
        residual_block_forward(x, params, use_projection=True,
                               mxu_dtype=jnp.float32))
    np.testing.assert_allclose(np.asarray(out_f32), np.asarray(ref),
                               rtol=3e-3, atol=3e-3)

    # bf16-MXU path (default, ~2x MXU throughput); bf16-level tolerance.
    out = jax.block_until_ready(
        residual_block_forward(x, params, use_projection=True))
    out = jax.block_until_ready(out)
    np.testing.assert_allclose(np.asarray(out), np.asarray(ref),
                               rtol=5e-2, atol=5e-2)
    assert out.shape == (N, FILTERS, H, W)

    print("KERNEL_OK")
</pallas_src>

<mosaic_0001>
module attributes {stable_mosaic.version = 11 : i64} {
  func.func @_resblock_kernel(%arg0: memref<32x64xf32, #tpu.memory_space<vmem>>, %arg1: memref<2x64x128xf32, #tpu.memory_space<vmem>>, %arg2: memref<64x256xf32, #tpu.memory_space<vmem>>, %arg3: memref<3x128x128xf32, #tpu.memory_space<vmem>>, %arg4: memref<128x128xf32, #tpu.memory_space<vmem>>, %arg5: memref<6x128xf32, #tpu.memory_space<vmem>>, %arg6: memref<32x128xf32, #tpu.memory_space<vmem>>) attributes {dimension_semantics = [], scalar_prefetch = 0 : i64, scratch_operands = 0 : i64, tpu.core_type = #tpu.core_type<tc>} {
    %c0 = arith.constant 0 : index
    %c0_0 = arith.constant 0 : index
    %0 = vector.load %arg4[%c0, %c0_0] : memref<128x128xf32, #tpu.memory_space<vmem>>, vector<128x128xf32>
    %c0_1 = arith.constant 0 : index
    %c0_2 = arith.constant 0 : index
    %1 = vector.load %arg5[%c0_1, %c0_2] : memref<6x128xf32, #tpu.memory_space<vmem>>, vector<6x128xf32>
    %2 = tpu.iota {dimensions = array<i32: 0>} : vector<32x1xi32>
    %c16_i32 = arith.constant 16 : i32
    %c0_i32 = arith.constant 0 : i32
    %3 = arith.cmpi eq, %c16_i32, %c0_i32 : i32
    %c1_i32 = arith.constant 1 : i32
    %4 = arith.select %3, %c1_i32, %c16_i32 : i32
    %5 = vector.broadcast %4 : i32 to vector<32x1xi32>
    %6 = arith.remsi %2, %5 : vector<32x1xi32>
    %c0_i32_3 = arith.constant 0 : i32
    %7 = vector.broadcast %c0_i32_3 : i32 to vector<32x1xi32>
    %8 = arith.cmpi ne, %6, %7 : vector<32x1xi32>
    %c0_i32_4 = arith.constant 0 : i32
    %9 = vector.broadcast %c0_i32_4 : i32 to vector<32x1xi32>
    %10 = arith.cmpi slt, %6, %9 : vector<32x1xi32>
    %c0_i32_5 = arith.constant 0 : i32
    %11 = arith.cmpi slt, %4, %c0_i32_5 : i32
    %12 = vector.broadcast %11 : i1 to vector<32x1xi1>
    %13 = vector.broadcast %12 : vector<32x1xi1> to vector<32x1xi1>
    %14 = arith.xori %10, %13 : vector<32x1xi1>
    %15 = arith.andi %14, %8 : vector<32x1xi1>
    %16 = vector.broadcast %4 : i32 to vector<32x1xi32>
    %17 = arith.addi %6, %16 : vector<32x1xi32>
    %18 = arith.select %15, %17, %6 : vector<32x1xi1>, vector<32x1xi32>
    %c0_i32_6 = arith.constant 0 : i32
    %19 = vector.broadcast %c0_i32_6 : i32 to vector<32x1xi32>
    %20 = arith.cmpi ne, %18, %19 : vector<32x1xi32>
    %c15_i32 = arith.constant 15 : i32
    %21 = vector.broadcast %c15_i32 : i32 to vector<32x1xi32>
    %22 = arith.cmpi ne, %18, %21 : vector<32x1xi32>
    %c0_7 = arith.constant 0 : index
    %c0_8 = arith.constant 0 : index
    %23 = vector.load %arg0[%c0_7, %c0_8] : memref<32x64xf32, #tpu.memory_space<vmem>>, vector<32x64xf32>
    %c0_9 = arith.constant 0 : index
    %c0_10 = arith.constant 0 : index
    %24 = vector.load %arg2[%c0_9, %c0_10] : memref<64x256xf32, #tpu.memory_space<vmem>>, vector<64x256xf32>
    %c0_11 = arith.constant 0 : index
    %c0_12 = arith.constant 0 : index
    %c0_13 = arith.constant 0 : index
    %25 = vector.load %arg1[%c0_11, %c0_12, %c0_13] : memref<2x64x128xf32, #tpu.memory_space<vmem>>, vector<1x64x128xf32>
    %26 = vector.shape_cast %25 : vector<1x64x128xf32> to vector<64x128xf32>
    %c1 = arith.constant 1 : index
    %c0_14 = arith.constant 0 : index
    %c0_15 = arith.constant 0 : index
    %27 = vector.load %arg1[%c1, %c0_14, %c0_15] : memref<2x64x128xf32, #tpu.memory_space<vmem>>, vector<1x64x128xf32>
    %28 = vector.shape_cast %27 : vector<1x64x128xf32> to vector<64x128xf32>
    %cst = arith.constant 0.000000e+00 : f32
    %29 = vector.broadcast %cst : f32 to vector<1x64xf32>
    %30 = vector.extract_strided_slice %23 {offsets = [0, 0], sizes = [31, 64], strides = [1, 1]} : vector<32x64xf32> to vector<31x64xf32>
    %31 = tpu.concatenate %29, %30 in 0 : vector<1x64xf32>, vector<31x64xf32> -> vector<32x64xf32>
    %cst_16 = arith.constant 0.000000e+00 : f32
    %32 = vector.shape_cast %20 : vector<32x1xi1> to vector<32x1xi1>
    %33 = vector.broadcast %32 : vector<32x1xi1> to vector<32x64xi1>
    %34 = vector.broadcast %cst_16 : f32 to vector<32x64xf32>
    %35 = arith.select %33, %31, %34 : vector<32x64xi1>, vector<32x64xf32>
    %36 = vector.extract_strided_slice %23 {offsets = [1, 0], sizes = [31, 64], strides = [1, 1]} : vector<32x64xf32> to vector<31x64xf32>
    %37 = tpu.concatenate %36, %29 in 0 : vector<31x64xf32>, vector<1x64xf32> -> vector<32x64xf32>
    %cst_17 = arith.constant 0.000000e+00 : f32
    %38 = vector.shape_cast %22 : vector<32x1xi1> to vector<32x1xi1>
    %39 = vector.broadcast %38 : vector<32x1xi1> to vector<32x64xi1>
    %40 = vector.broadcast %cst_17 : f32 to vector<32x64xf32>
    %41 = arith.select %39, %37, %40 : vector<32x64xi1>, vector<32x64xf32>
    %cst_18 = arith.constant dense<0.000000e+00> : vector<32x256xf32>
    %42 = tpu.matmul %23, %24, %cst_18 {dimension_numbers = #tpu.dot_dimension_numbers<[1], [0], [0], [1], [0, 0, 1, 1], [], []>} : vector<32x64xf32>, vector<64x256xf32>, vector<32x256xf32> -> vector<32x256xf32>
    %43 = vector.extract_strided_slice %42 {offsets = [0, 0], sizes = [32, 128], strides = [1, 1]} : vector<32x256xf32> to vector<32x128xf32>
    %cst_19 = arith.constant dense<0.000000e+00> : vector<32x128xf32>
    %44 = tpu.matmul %35, %26, %cst_19 {dimension_numbers = #tpu.dot_dimension_numbers<[1], [0], [0], [1], [0, 0, 1, 1], [], []>} : vector<32x64xf32>, vector<64x128xf32>, vector<32x128xf32> -> vector<32x128xf32>
    %45 = arith.addf %43, %44 : vector<32x128xf32>
    %cst_20 = arith.constant dense<0.000000e+00> : vector<32x128xf32>
    %46 = tpu.matmul %41, %28, %cst_20 {dimension_numbers = #tpu.dot_dimension_numbers<[1], [0], [0], [1], [0, 0, 1, 1], [], []>} : vector<32x64xf32>, vector<64x128xf32>, vector<32x128xf32> -> vector<32x128xf32>
    %47 = arith.addf %45, %46 : vector<32x128xf32>
    %48 = vector.extract_strided_slice %42 {offsets = [0, 128], sizes = [32, 128], strides = [1, 1]} : vector<32x256xf32> to vector<32x128xf32>
    %49 = vector.extract_strided_slice %1 {offsets = [4, 0], sizes = [1, 128], strides = [1, 1]} : vector<6x128xf32> to vector<1x128xf32>
    %50 = vector.extract_strided_slice %1 {offsets = [5, 0], sizes = [1, 128], strides = [1, 1]} : vector<6x128xf32> to vector<1x128xf32>
    %cst_21 = arith.constant dense<0.000000e+00> : vector<128xf32>
    %51 = vector.multi_reduction <add>, %48, %cst_21 [0] : vector<32x128xf32> to vector<128xf32>
    %52 = vector.shape_cast %51 : vector<128xf32> to vector<1x128xf32>
    %cst_22 = arith.constant dense<0.000000e+00> : vector<1x128xf32>
    %53 = tpu.matmul %52, %0, %cst_22 {dimension_numbers = #tpu.dot_dimension_numbers<[1], [0], [0], [1], [0, 0, 1, 1], [], []>} : vector<1x128xf32>, vector<128x128xf32>, vector<1x128xf32> -> vector<1x128xf32>
    %cst_23 = arith.constant 0.001953125 : f32
    %54 = vector.broadcast %cst_23 : f32 to vector<1x128xf32>
    %55 = arith.mulf %53, %54 : vector<1x128xf32>
    %56 = vector.broadcast %55 : vector<1x128xf32> to vector<32x128xf32>
    %57 = arith.subf %48, %56 : vector<32x128xf32>
    %58 = arith.mulf %57, %57 : vector<32x128xf32>
    %cst_24 = arith.constant dense<0.000000e+00> : vector<128xf32>
    %59 = vector.multi_reduction <add>, %58, %cst_24 [0] : vector<32x128xf32> to vector<128xf32>
    %60 = vector.shape_cast %59 : vector<128xf32> to vector<1x128xf32>
    %cst_25 = arith.constant dense<0.000000e+00> : vector<1x128xf32>
    %61 = tpu.matmul %60, %0, %cst_25 {dimension_numbers = #tpu.dot_dimension_numbers<[1], [0], [0], [1], [0, 0, 1, 1], [], []>} : vector<1x128xf32>, vector<128x128xf32>, vector<1x128xf32> -> vector<1x128xf32>
    %cst_26 = arith.constant 0.001953125 : f32
    %62 = vector.broadcast %cst_26 : f32 to vector<1x128xf32>
    %63 = arith.mulf %61, %62 : vector<1x128xf32>
    %cst_27 = arith.constant 9.99999974E-6 : f32
    %64 = vector.broadcast %cst_27 : f32 to vector<1x128xf32>
    %65 = arith.addf %63, %64 : vector<1x128xf32>
    %66 = math.rsqrt %65 : vector<1x128xf32>
    %67 = arith.mulf %49, %66 : vector<1x128xf32>
    %68 = vector.broadcast %67 : vector<1x128xf32> to vector<32x128xf32>
    %69 = arith.mulf %57, %68 : vector<32x128xf32>
    %70 = vector.broadcast %50 : vector<1x128xf32> to vector<32x128xf32>
    %71 = arith.addf %69, %70 : vector<32x128xf32>
    %72 = vector.extract_strided_slice %1 {offsets = [0, 0], sizes = [1, 128], strides = [1, 1]} : vector<6x128xf32> to vector<1x128xf32>
    %73 = vector.extract_strided_slice %1 {offsets = [1, 0], sizes = [1, 128], strides = [1, 1]} : vector<6x128xf32> to vector<1x128xf32>
    %cst_28 = arith.constant dense<0.000000e+00> : vector<128xf32>
    %74 = vector.multi_reduction <add>, %47, %cst_28 [0] : vector<32x128xf32> to vector<128xf32>
    %75 = vector.shape_cast %74 : vector<128xf32> to vector<1x128xf32>
    %cst_29 = arith.constant dense<0.000000e+00> : vector<1x128xf32>
    %76 = tpu.matmul %75, %0, %cst_29 {dimension_numbers = #tpu.dot_dimension_numbers<[1], [0], [0], [1], [0, 0, 1, 1], [], []>} : vector<1x128xf32>, vector<128x128xf32>, vector<1x128xf32> -> vector<1x128xf32>
    %cst_30 = arith.constant 0.001953125 : f32
    %77 = vector.broadcast %cst_30 : f32 to vector<1x128xf32>
    %78 = arith.mulf %76, %77 : vector<1x128xf32>
    %79 = vector.broadcast %78 : vector<1x128xf32> to vector<32x128xf32>
    %80 = arith.subf %47, %79 : vector<32x128xf32>
    %81 = arith.mulf %80, %80 : vector<32x128xf32>
    %cst_31 = arith.constant dense<0.000000e+00> : vector<128xf32>
    %82 = vector.multi_reduction <add>, %81, %cst_31 [0] : vector<32x128xf32> to vector<128xf32>
    %83 = vector.shape_cast %82 : vector<128xf32> to vector<1x128xf32>
    %cst_32 = arith.constant dense<0.000000e+00> : vector<1x128xf32>
    %84 = tpu.matmul %83, %0, %cst_32 {dimension_numbers = #tpu.dot_dimension_numbers<[1], [0], [0], [1], [0, 0, 1, 1], [], []>} : vector<1x128xf32>, vector<128x128xf32>, vector<1x128xf32> -> vector<1x128xf32>
    %cst_33 = arith.constant 0.001953125 : f32
    %85 = vector.broadcast %cst_33 : f32 to vector<1x128xf32>
    %86 = arith.mulf %84, %85 : vector<1x128xf32>
    %cst_34 = arith.constant 9.99999974E-6 : f32
    %87 = vector.broadcast %cst_34 : f32 to vector<1x128xf32>
    %88 = arith.addf %86, %87 : vector<1x128xf32>
    %89 = math.rsqrt %88 : vector<1x128xf32>
    %90 = arith.mulf %72, %89 : vector<1x128xf32>
    %91 = vector.broadcast %90 : vector<1x128xf32> to vector<32x128xf32>
    %92 = arith.mulf %80, %91 : vector<32x128xf32>
    %93 = vector.broadcast %73 : vector<1x128xf32> to vector<32x128xf32>
    %94 = arith.addf %92, %93 : vector<32x128xf32>
    %cst_35 = arith.constant 0.000000e+00 : f32
    %95 = vector.broadcast %cst_35 : f32 to vector<32x128xf32>
    %96 = arith.maximumf %94, %95 : vector<32x128xf32>
    %c1_36 = arith.constant 1 : index
    %c0_37 = arith.constant 0 : index
    %c0_38 = arith.constant 0 : index
    %97 = vector.load %arg3[%c1_36, %c0_37, %c0_38] : memref<3x128x128xf32, #tpu.memory_space<vmem>>, vector<1x128x128xf32>
    %98 = vector.shape_cast %97 : vector<1x128x128xf32> to vector<128x128xf32>
    %c0_39 = arith.constant 0 : index
    %c0_40 = arith.constant 0 : index
    %c0_41 = arith.constant 0 : index
    %99 = vector.load %arg3[%c0_39, %c0_40, %c0_41] : memref<3x128x128xf32, #tpu.memory_space<vmem>>, vector<1x128x128xf32>
    %100 = vector.shape_cast %99 : vector<1x128x128xf32> to vector<128x128xf32>
    %c2 = arith.constant 2 : index
    %c0_42 = arith.constant 0 : index
    %c0_43 = arith.constant 0 : index
    %101 = vector.load %arg3[%c2, %c0_42, %c0_43] : memref<3x128x128xf32, #tpu.memory_space<vmem>>, vector<1x128x128xf32>
    %102 = vector.shape_cast %101 : vector<1x128x128xf32> to vector<128x128xf32>
    %cst_44 = arith.constant 0.000000e+00 : f32
    %103 = vector.broadcast %cst_44 : f32 to vector<1x128xf32>
    %104 = vector.extract_strided_slice %96 {offsets = [0, 0], sizes = [31, 128], strides = [1, 1]} : vector<32x128xf32> to vector<31x128xf32>
    %105 = tpu.concatenate %103, %104 in 0 : vector<1x128xf32>, vector<31x128xf32> -> vector<32x128xf32>
    %cst_45 = arith.constant 0.000000e+00 : f32
    %106 = vector.shape_cast %20 : vector<32x1xi1> to vector<32x1xi1>
    %107 = vector.broadcast %106 : vector<32x1xi1> to vector<32x128xi1>
    %108 = vector.broadcast %cst_45 : f32 to vector<32x128xf32>
    %109 = arith.select %107, %105, %108 : vector<32x128xi1>, vector<32x128xf32>
    %110 = vector.extract_strided_slice %96 {offsets = [1, 0], sizes = [31, 128], strides = [1, 1]} : vector<32x128xf32> to vector<31x128xf32>
    %111 = tpu.concatenate %110, %103 in 0 : vector<31x128xf32>, vector<1x128xf32> -> vector<32x128xf32>
    %cst_46 = arith.constant 0.000000e+00 : f32
    %112 = vector.shape_cast %22 : vector<32x1xi1> to vector<32x1xi1>
    %113 = vector.broadcast %112 : vector<32x1xi1> to vector<32x128xi1>
    %114 = vector.broadcast %cst_46 : f32 to vector<32x128xf32>
    %115 = arith.select %113, %111, %114 : vector<32x128xi1>, vector<32x128xf32>
    %cst_47 = arith.constant dense<0.000000e+00> : vector<32x128xf32>
    %116 = tpu.matmul %96, %98, %cst_47 {dimension_numbers = #tpu.dot_dimension_numbers<[1], [0], [0], [1], [0, 0, 1, 1], [], []>} : vector<32x128xf32>, vector<128x128xf32>, vector<32x128xf32> -> vector<32x128xf32>
    %cst_48 = arith.constant dense<0.000000e+00> : vector<32x128xf32>
    %117 = tpu.matmul %109, %100, %cst_48 {dimension_numbers = #tpu.dot_dimension_numbers<[1], [0], [0], [1], [0, 0, 1, 1], [], []>} : vector<32x128xf32>, vector<128x128xf32>, vector<32x128xf32> -> vector<32x128xf32>
    %118 = arith.addf %116, %117 : vector<32x128xf32>
    %cst_49 = arith.constant dense<0.000000e+00> : vector<32x128xf32>
    %119 = tpu.matmul %115, %102, %cst_49 {dimension_numbers = #tpu.dot_dimension_numbers<[1], [0], [0], [1], [0, 0, 1, 1], [], []>} : vector<32x128xf32>, vector<128x128xf32>, vector<32x128xf32> -> vector<32x128xf32>
    %120 = arith.addf %118, %119 : vector<32x128xf32>
    %121 = vector.extract_strided_slice %1 {offsets = [2, 0], sizes = [1, 128], strides = [1, 1]} : vector<6x128xf32> to vector<1x128xf32>
    %122 = vector.extract_strided_slice %1 {offsets = [3, 0], sizes = [1, 128], strides = [1, 1]} : vector<6x128xf32> to vector<1x128xf32>
    %cst_50 = arith.constant dense<0.000000e+00> : vector<128xf32>
    %123 = vector.multi_reduction <add>, %120, %cst_50 [0] : vector<32x128xf32> to vector<128xf32>
    %124 = vector.shape_cast %123 : vector<128xf32> to vector<1x128xf32>
    %cst_51 = arith.constant dense<0.000000e+00> : vector<1x128xf32>
    %125 = tpu.matmul %124, %0, %cst_51 {dimension_numbers = #tpu.dot_dimension_numbers<[1], [0], [0], [1], [0, 0, 1, 1], [], []>} : vector<1x128xf32>, vector<128x128xf32>, vector<1x128xf32> -> vector<1x128xf32>
    %cst_52 = arith.constant 0.001953125 : f32
    %126 = vector.broadcast %cst_52 : f32 to vector<1x128xf32>
    %127 = arith.mulf %125, %126 : vector<1x128xf32>
    %128 = vector.broadcast %127 : vector<1x128xf32> to vector<32x128xf32>
    %129 = arith.subf %120, %128 : vector<32x128xf32>
    %130 = arith.mulf %129, %129 : vector<32x128xf32>
    %cst_53 = arith.constant dense<0.000000e+00> : vector<128xf32>
    %131 = vector.multi_reduction <add>, %130, %cst_53 [0] : vector<32x128xf32> to vector<128xf32>
    %132 = vector.shape_cast %131 : vector<128xf32> to vector<1x128xf32>
    %cst_54 = arith.constant dense<0.000000e+00> : vector<1x128xf32>
    %133 = tpu.matmul %132, %0, %cst_54 {dimension_numbers = #tpu.dot_dimension_numbers<[1], [0], [0], [1], [0, 0, 1, 1], [], []>} : vector<1x128xf32>, vector<128x128xf32>, vector<1x128xf32> -> vector<1x128xf32>
    %cst_55 = arith.constant 0.001953125 : f32
    %134 = vector.broadcast %cst_55 : f32 to vector<1x128xf32>
    %135 = arith.mulf %133, %134 : vector<1x128xf32>
    %cst_56 = arith.constant 9.99999974E-6 : f32
    %136 = vector.broadcast %cst_56 : f32 to vector<1x128xf32>
    %137 = arith.addf %135, %136 : vector<1x128xf32>
    %138 = math.rsqrt %137 : vector<1x128xf32>
    %139 = arith.mulf %121, %138 : vector<1x128xf32>
    %140 = vector.broadcast %139 : vector<1x128xf32> to vector<32x128xf32>
    %141 = arith.mulf %129, %140 : vector<32x128xf32>
    %142 = vector.broadcast %122 : vector<1x128xf32> to vector<32x128xf32>
    %143 = arith.addf %141, %142 : vector<32x128xf32>
    %cst_57 = arith.constant 0.000000e+00 : f32
    %144 = vector.broadcast %cst_57 : f32 to vector<32x128xf32>
    %145 = arith.maximumf %143, %144 : vector<32x128xf32>
    %146 = arith.addf %145, %71 : vector<32x128xf32>
    %cst_58 = arith.constant 0.000000e+00 : f32
    %147 = vector.broadcast %cst_58 : f32 to vector<32x128xf32>
    %148 = arith.maximumf %146, %147 : vector<32x128xf32>
    %c0_59 = arith.constant 0 : index
    %c0_60 = arith.constant 0 : index
    %149 = vector.load %arg6[%c0_59, %c0_60] : memref<32x128xf32, #tpu.memory_space<vmem>>, vector<32x128xf32>
    tpu.vector_store %arg6[%c0_59, %c0_60], %148 {strides = array<i32>} : memref<32x128xf32, #tpu.memory_space<vmem>>, vector<32x128xf32>,
    return
  }
}

</mosaic_0001>

<bundles_post_ra>
// kernel: tpu_custom_call.1
= control target key start
LH: loop header
LB: loop body
LE: loop exit
PB: predicated region body
PF: predicated region fallthrough
CT: control target
= control target key end

     0   :  { %11 = vsyncpa [#allocation3], 0  ;;  %s1487_s0 = inlined_call_operand.hbm [shape: f32[32,64], index: 0, kind: input, shape index: {}]   ;;  %s1488_s1 = inlined_call_operand.hbm [shape: f32[2,64,128], index: 1, kind: input, shape index: {}]   ;;  %s1489_s2 = inlined_call_operand.hbm [shape: f32[64,256], index: 2, kind: input, shape index: {}]   ;;  %s1490_s3 = inlined_call_operand.hbm [shape: f32[3,128,128], index: 3, kind: input, shape index: {}]   ;;  %s1491_s4 = inlined_call_operand.hbm [shape: f32[128,128], index: 4, kind: input, shape index: {}]   ;;  %s1492_s5 = inlined_call_operand.hbm [shape: f32[6,128], index: 5, kind: input, shape index: {}]   ;;  %s1493_s6 = inlined_call_operand.hbm [shape: f32[32,128], index: 6, kind: output, shape index: {}]  }
   0x1   :  { %12 = vsyncpa [#allocation6], 0 }
   0x2   :  { %13 = vsyncpa [#allocation9], 0 }
   0x3   :  { %14 = vsyncpa [#allocation12], 0 }
   0x4   :  { %15 = vsyncpa [#allocation4], 0  ;;  %s33_s23 = sshll.u32 %s1488_s1, 4  ;;  %s1155_s24 = smov [#allocation5]   ;;  %s34_s23 = int_to_ptr.hbm [resolvable:$true] %s33_s23 }
   0x5   :  { %s35_s25 = sshll.u32 %s1155_s24, 4  ;;  %s59_s28 = sshll.u32 %s1490_s3, 4  ;;  %s36_s25 = int_to_ptr.vmem [resolvable:$true] %s35_s25  ;;  %s60_s28 = int_to_ptr.hbm [resolvable:$true] %s59_s28 }
   0x6   :  { %s1156_s29 = smov 128   ;;  %s1157_s30 = smov 8  }
   0x7   :  { %41 = dma.hbm_to_vmem [thread:$0]  %s34_s23, 2048, %s36_s25, [#allocation6], %s1156_s29, %s1156_s29, %s1157_s30  }
   0x8   :  { %s1158_s7 = smov [#allocation8]   ;;  %s20_s1 = sshll.u32 %s1487_s0, 4  ;;  %s21_s1 = int_to_ptr.hbm [resolvable:$true] %s20_s1 }
   0x9   :  { %s61_s8 = sshll.u32 %s1158_s7, 4  ;;  %s46_s12 = sshll.u32 %s1489_s2, 4  ;;  %s62_s8 = int_to_ptr.vmem [resolvable:$true] %s61_s8  ;;  %s47_s12 = int_to_ptr.hbm [resolvable:$true] %s46_s12 }
   0xa   :  { %67 = dma.hbm_to_vmem [thread:$0]  %s60_s28, 6144, %s62_s8, [#allocation9], %s1156_s29, %s1156_s29, %s1157_s30  }
   0xb   :  { %s1159_s13 = smov [#allocation2]   ;;  %s1160_s15 = smov [#allocation7]  }
   0xc   :  { %s22_s14 = sshll.u32 %s1159_s13, 4  ;;  %s48_s0 = sshll.u32 %s1160_s15, 4  ;;  %s23_s14 = int_to_ptr.vmem [resolvable:$true] %s22_s14  ;;  %s49_s0 = int_to_ptr.vmem [resolvable:$true] %s48_s0 }
   0xd   :  { %28 = dma.hbm_to_vmem [thread:$0]  %s21_s1, 512, %s23_s14, [#allocation3], %s1156_s29, %s1156_s29, %s1157_s30  }
   0xe   :  { %s1161_s16 = smov 256   ;;  %s1162_s17 = smov 16  }
   0xf   :  { %54 = dma.hbm_to_vmem [thread:$0]  %s47_s12, 2048, %s49_s0, [#allocation6], %s1161_s16, %s1161_s16, %s1162_s17  }
  0x10   :  { %s72_s20 = sshll.u32 %s1491_s4, 4  ;;  %s1163_s2 = smov [#allocation10]   ;;  %s73_s20 = int_to_ptr.hbm [resolvable:$true] %s72_s20 }
  0x11   :  { %s74_s21 = sshll.u32 %s1163_s2, 4  ;;  %s86_s24 = sshll.u32 %s1492_s5, 4  ;;  %s75_s21 = int_to_ptr.vmem [resolvable:$true] %s74_s21  ;;  %s87_s24 = int_to_ptr.hbm [resolvable:$true] %s86_s24 }
  0x12   :  { %80 = dma.hbm_to_vmem [thread:$0]  %s73_s20, 2048, %s75_s21, [#allocation9], %s1156_s29, %s1156_s29, %s1157_s30  }
  0x13   :  { %s1164_s25 = smov [#allocation11]  }
  0x14   :  { %s88_s26 = sshll.u32 %s1164_s25, 4  ;;  %s89_s26 = int_to_ptr.vmem [resolvable:$true] %s88_s26 }
  0x15   :  { %91 = dma.hbm_to_vmem [thread:$0]  %s87_s24, 128, %s89_s26, [#allocation12]  }
  0x16   :  { %1145 = dma.done.wait [#allocation3], 512  }
  0x17   :  { %1146 = vsyncadd [#allocation3], 4294966784 }
  0x18   :  { %1147 = dma.done.wait [#allocation6], 4096  }
  0x19   :  { %1148 = vsyncadd [#allocation6], 4294963200 }
  0x1a   :  { %1149 = dma.done.wait [#allocation9], 8192  }
  0x1b   :  { %1150 = vsyncadd [#allocation9], 4294959104 }
  0x1c   :  { %1151 = dma.done.wait [#allocation12], 128  }
  0x1d   :  { %1152 = vsyncadd [#allocation12], 4294967168  ;;  %v133_v0 = vlaneseq  ;;  %v213_v1 = vld [vmem:[#allocation7 + $0x78] sm:$0xff]  ;;  %v211_v3 = vld [vmem:[#allocation7 + $0x68] sm:$0xff]  ;;  %vm235_vm0 = vcmask 1040384   ;;  %vm260_vm2 = vcmask 1046528  }
  0x1e   :  { %v221_v2 = vld [vmem:[#allocation5 + $0x38] sm:$0xff]  ;;  %331 = vmatpush.msra.mxu1 %v213_v1  ;;  %v220_v4 = vld [vmem:[#allocation5 + $0x30] sm:$0xff]  ;;  %v219_v7 = vld [vmem:[#allocation5 + $0x28] sm:$0xff]  ;;  %vm285_vm3 = vcmask 523264   ;;  %s1165_s4 = smov [#allocation13]   ;;  %s924_s7 = sshll.u32 %s1493_s6, 4  ;;  %s925_s7 = int_to_ptr.hbm [resolvable:$true] %s924_s7 }
  0x1f   :  { %372 = vmatpush.msra.mxu2 %v221_v2  ;;  %v230_v5 = vld [vmem:[#allocation5 + $0x78] sm:$0xff]  ;;  %v229_v8 = vld [vmem:[#allocation5 + $0x70] sm:$0xff]  ;;  %v1231_v10 = vshrl.u32 %v133_v0, 7  ;;  %v228_v11 = vld [vmem:[#allocation5 + $0x68] sm:$0xff]  ;;  %s922_s5 = sshll.u32 %s1165_s4, 4  ;;  %s923_s5 = int_to_ptr.vmem [resolvable:$true] %s922_s5 }
  0x20   :  { %v209_v6 = vld [vmem:[#allocation7 + $0x58] sm:$0xff]  ;;  %417 = vmatpush.msra.mxu3 %v230_v5  ;;  %v212_v9 = vld [vmem:[#allocation7 + $0x70] sm:$0xff]  ;;  %332 = vmatpush.msra.mxu1 %v211_v3  ;;  %v207_v12 = vld [vmem:[#allocation7 + $0x48] sm:$0xff] }
  0x21   :  { %373 = vmatpush.msra.mxu2 %v220_v4  ;;  %302 = vmatpush.msra.mxu0 %v212_v9  ;;  %v218_v13 = vld [vmem:[#allocation5 + $0x20] sm:$0xff]  ;;  %v208_v16 = vld [vmem:[#allocation7 + $0x50] sm:$0xff]  ;;  %v205_v17 = vld [vmem:[#allocation7 + $0x38] sm:$0xff]  ;;  %v142_v19 = vand.u32 15, %v1231_v10  ;;  %v135_v39 = vadd.s32 8, %v1231_v10  ;;  %v136_v49 = vadd.s32 16, %v1231_v10 }
  0x22   :  { %418 = vmatpush.msra.mxu3 %v229_v8  ;;  %v210_v14 = vld [vmem:[#allocation7 + $0x60] sm:$0xff]  ;;  %333 = vmatpush.msra.mxu1 %v209_v6  ;;  %v217_v18 = vld [vmem:[#allocation5 + $0x18] sm:$0xff]  ;;  %v203_v22 = vld [vmem:[#allocation7 + $0x28] sm:$0xff]  ;;  %v137_v60 = vadd.s32 24, %v1231_v10 }
  0x23   :  { %374 = vmatpush.msra.mxu2 %v219_v7  ;;  %v227_v15 = vld [vmem:[#allocation5 + $0x60] sm:$0xff]  ;;  %303 = vmatpush.msra.mxu0 %v210_v14  ;;  %v226_v20 = vld [vmem:[#allocation5 + $0x58] sm:$0xff]  ;;  %v216_v23 = vld [vmem:[#allocation5 + $0x10] sm:$0xff]  ;;  %vm1234_vm1 = vcmp.ne.s32.totalorder %v142_v19, 0  ;;  %v149_v46 = vand.u32 15, %v135_v39  ;;  %v156_v53 = vand.u32 15, %v136_v49 }
  0x24   :  { %419 = vmatpush.msra.mxu3 %v228_v11  ;;  %334 = vmatpush.msra.mxu1 %v207_v12  ;;  %v206_v21 = vld [vmem:[#allocation7 + $0x40] sm:$0xff]  ;;  %v225_v24 = vld [vmem:[#allocation5 + $0x50] sm:$0xff]  ;;  %v201_v27 = vld [vmem:[#allocation7 + $0x18] sm:$0xff]  ;;  %v163_v63 = vand.u32 15, %v137_v60 }
  0x25   :  { %375 = vmatpush.msra.mxu2 %v218_v13  ;;  %304 = vmatpush.msra.mxu0 %v208_v16  ;;  %v204_v25 = vld [vmem:[#allocation7 + $0x30] sm:$0xff]  ;;  %v194_v26 = vld [vmem:[#allocation2] sm:$0xff]  ;;  %v215_v28 = vld [vmem:[#allocation5 + $0x8] sm:$0xff]  ;;  %vm1248_vm4 = vcmp.ne.s32.totalorder %v149_v46, 15  ;;  %vm1259_vm5 = vcmp.ne.s32.totalorder %v156_v53, 0 }
  0x26   :  { %420 = vmatpush.msra.mxu3 %v227_v15  ;;  %335 = vmatpush.msra.mxu1 %v205_v17  ;;  %v236_v30 = vrot.slane %v194_v26, 7  ;;  %v195_v31 = vld [vmem:[#allocation2 + $0x8] sm:$0xff]  ;;  %v202_v33 = vld [vmem:[#allocation7 + $0x20] sm:$0xff]  ;;  %v261_v34 = vrot.slane %v194_v26, 1  ;;  %v196_v41 = vld [vmem:[#allocation2 + $0x10] sm:$0xff]  ;;  %vm1273_vm6 = vcmp.ne.s32.totalorder %v163_v63, 15 }
  0x27   :  { %376 = vmatpush.msra.mxu2 %v217_v18  ;;  %305 = vmatpush.msra.mxu0 %v206_v21  ;;  %v224_v32 = vld [vmem:[#allocation5 + $0x48] sm:$0xff]  ;;  %v262_v35 = vrot.slane %v195_v31, 1  ;;  %v214_v37 = vld [vmem:[#allocation5] sm:$0xff]  ;;  %v200_v43 = vld [vmem:[#allocation7 + $0x10] sm:$0xff]  ;;  %v264_v47 = vrot.slane %v196_v41, 1  ;;  %v237_v48 = vrot.slane %v195_v31, 7 }
  0x28   :  { %421 = vmatpush.msra.mxu3 %v226_v20  ;;  %336 = vmatpush.msra.mxu1 %v203_v22  ;;  %v199_v36 = vld [vmem:[#allocation7 + $0x8] sm:$0xff]  ;;  %v247_v38 = vsel %vm235_vm0, 0.0, %v236_v30  ;;  %v223_v42 = vld [vmem:[#allocation5 + $0x40] sm:$0xff]  ;;  %v239_v54 = vrot.slane %v196_v41, 7  ;;  %v197_v56 = vld [vmem:[#allocation2 + $0x18] sm:$0xff] }
  0x29   :  { %377 = vmatpush.msra.mxu2 %v216_v23  ;;  %306 = vmatpush.msra.mxu0 %v204_v25  ;;  %v256_v40 = vsel %vm1234_vm1, %v247_v38, 0.0  ;;  %v263_v44 = vsel %vm260_vm2, %v261_v34, %v262_v35  ;;  %v198_v45 = vld [vmem:[#allocation7] sm:$0xff]  ;;  %v265_v51 = vsel %vm260_vm2, %v262_v35, %v264_v47  ;;  %v238_v52 = vsel %vm235_vm0, %v236_v30, %v237_v48  ;;  %v1285_v5 = vld [vmem:[#allocation10 + $0x78] sm:$0xff]  ;;  %v1289_v6 = vld [vmem:[#allocation10 + $0x70] sm:$0xff] }
  0x2a   :  { %422 = vmatpush.msra.mxu3 %v225_v24  ;;  %337 = vmatpush.msra.mxu1 %v201_v27  ;;  %v282_v55 = vsel %vm1248_vm4, %v265_v51, 0.0  ;;  %v240_v58 = vsel %vm235_vm0, %v237_v48, %v239_v54  ;;  %v266_v59 = vrot.slane %v197_v56, 1  ;;  %v241_v0 = vrot.slane %v197_v56, 7  ;;  %v1291_v7 = vld [vmem:[#allocation10 + $0x68] sm:$0xff]  ;;  %v1301_v8 = vld [vmem:[#allocation10 + $0x60] sm:$0xff]  ;;  %v1307_v9 = vld [vmem:[#allocation10 + $0x58] sm:$0xff] }
  0x2b   :  { %378 = vmatpush.msra.mxu2 %v215_v28  ;;  %307 = vmatpush.msra.mxu0 %v202_v33  ;;  %v258_v61 = vsel %vm1259_vm5, %v240_v58, 0.0  ;;  %v1313_v10 = vld [vmem:[#allocation10 + $0x50] sm:$0xff]  ;;  %v1319_v11 = vld [vmem:[#allocation10 + $0x48] sm:$0xff]  ;;  %v1325_v12 = vld [vmem:[#allocation10 + $0x40] sm:$0xff] }
  0x2c   :  { %423 = vmatpush.msra.mxu3 %v224_v32  ;;  %338 = vmatpush.msra.mxu1 %v199_v36  ;;  %v267_v62 = vsel %vm260_vm2, %v264_v47, %v266_v59  ;;  %v272_v2 = vsel %vm260_vm2, %v266_v59, 0.0  ;;  %v242_v3 = vsel %vm235_vm0, %v239_v54, %v241_v0  ;;  %v1331_v13 = vld [vmem:[#allocation10 + $0x38] sm:$0xff]  ;;  %v1337_v14 = vld [vmem:[#allocation10 + $0x30] sm:$0xff]  ;;  %v1343_v15 = vld [vmem:[#allocation10 + $0x28] sm:$0xff] }
  0x2d   :  { %379 = vmatpush.msra.mxu2 %v214_v37  ;;  %944 = vmatmul.msk.f32.vlgmr.msra.gmra.mxu1 %vm285_vm3, %v194_v26  ;;  %v284_v4 = vsel %vm1273_vm6, %v272_v2, 0.0  ;;  %v1349_v16 = vld [vmem:[#allocation10 + $0x20] sm:$0xff]  ;;  %v1355_v17 = vld [vmem:[#allocation10 + $0x18] sm:$0xff]  ;;  %v1363_v19 = vld [vmem:[#allocation10 + $0x10] sm:$0xff] }
  0x2e   :  { %948 = vmatmul.msk.f32.vlgmr.msra.gmra.mxu2 %vm285_vm3, %v256_v40  ;;  %424 = vmatpush.msra.mxu3 %v223_v42  ;;  %v1369_v20 = vld [vmem:[#allocation10 + $0x8] sm:$0xff]  ;;  %v1375_v22 = vld [vmem:[#allocation10] sm:$0xff] }
  0x2f   :  { %308 = vmatpush.msra.mxu0 %v200_v43  ;;  %952 = vmatmul.msk.f32.vlgmr.msra.gmra.mxu3 %vm285_vm3, %v263_v44 }
  0x30   :  { %545 = vmatpush.msrb.mxu2 %v1285_v5  ;;  %490 = vmatpush.msrb.mxu1 %v1285_v5 }
  0x31   :  { %309 = vmatpush.msra.mxu0 %v198_v45  ;;  %584 = vmatpush.msrb.mxu3 %v1285_v5 }
  0x32   :  { %940 = vmatmul.msk.f32.vlgmr.msra.gmra.mxu0 %vm285_vm3, %v194_v26  ;;  %546 = vmatpush.msrb.mxu2 %v1289_v6 }
  0x33   :  { %451 = vmatpush.msrb.mxu0 %v1285_v5  ;;  %491 = vmatpush.msrb.mxu1 %v1289_v6 }
  0x34   :  { %585 = vmatpush.msrb.mxu3 %v1289_v6  ;;  %547 = vmatpush.msrb.mxu2 %v1291_v7 }
  0x35   :  { %945 = vmatmul.msk.f32.gmra.mxu1 %vm285_vm3, %v195_v31  ;;  %452 = vmatpush.msrb.mxu0 %v1289_v6 }
  0x36   :  { %949 = vmatmul.msk.f32.gmra.mxu2 %vm285_vm3, %v238_v52  ;;  %492 = vmatpush.msrb.mxu1 %v1291_v7 }
  0x37   :  { %953 = vmatmul.msk.f32.gmra.mxu3 %vm285_vm3, %v282_v55  ;;  %453 = vmatpush.msrb.mxu0 %v1291_v7 }
  0x38   :  { %586 = vmatpush.msrb.mxu3 %v1291_v7  ;;  %548 = vmatpush.msrb.mxu2 %v1301_v8 }
  0x39   :  { %454 = vmatpush.msrb.mxu0 %v1301_v8  ;;  %493 = vmatpush.msrb.mxu1 %v1301_v8 }
  0x3a   :  { %941 = vmatmul.msk.f32.gmra.mxu0 %vm285_vm3, %v195_v31  ;;  %587 = vmatpush.msrb.mxu3 %v1301_v8 }
  0x3b   :  { %455 = vmatpush.msrb.mxu0 %v1307_v9  ;;  %549 = vmatpush.msrb.mxu2 %v1307_v9 }
  0x3c   :  { %494 = vmatpush.msrb.mxu1 %v1307_v9  ;;  %588 = vmatpush.msrb.mxu3 %v1307_v9 }
  0x3d   :  { %946 = vmatmul.msk.f32.gmra.mxu1 %vm285_vm3, %v196_v41  ;;  %456 = vmatpush.msrb.mxu0 %v1313_v10 }
  0x3e   :  { %950 = vmatmul.msk.f32.gmra.mxu2 %vm285_vm3, %v258_v61  ;;  %495 = vmatpush.msrb.mxu1 %v1313_v10 }
  0x3f   :  { %954 = vmatmul.msk.f32.gmra.mxu3 %vm285_vm3, %v267_v62  ;;  %550 = vmatpush.msrb.mxu2 %v1313_v10 }
  0x40   :  { %589 = vmatpush.msrb.mxu3 %v1313_v10  ;;  %457 = vmatpush.msrb.mxu0 %v1319_v11 }
  0x41   :  { %551 = vmatpush.msrb.mxu2 %v1319_v11  ;;  %496 = vmatpush.msrb.mxu1 %v1319_v11 }
  0x42   :  { %942 = vmatmul.msk.f32.gmra.mxu0 %vm285_vm3, %v196_v41  ;;  %590 = vmatpush.msrb.mxu3 %v1319_v11 }
  0x43   :  { %458 = vmatpush.msrb.mxu0 %v1325_v12  ;;  %552 = vmatpush.msrb.mxu2 %v1325_v12 }
  0x44   :  { %497 = vmatpush.msrb.mxu1 %v1325_v12  ;;  %591 = vmatpush.msrb.mxu3 %v1325_v12 }
  0x45   :  { %947 = vmatmul.msk.f32.gmra.mxu1 %vm285_vm3, %v197_v56  ;;  %459 = vmatpush.msrb.mxu0 %v1331_v13 }
  0x46   :  { %951 = vmatmul.msk.f32.gmra.mxu2 %vm285_vm3, %v242_v3  ;;  %498 = vmatpush.msrb.mxu1 %v1331_v13 }
  0x47   :  { %955 = vmatmul.msk.f32.gmra.mxu3 %vm285_vm3, %v284_v4  ;;  %553 = vmatpush.msrb.mxu2 %v1331_v13 }
  0x48   :  { %592 = vmatpush.msrb.mxu3 %v1331_v13  ;;  %460 = vmatpush.msrb.mxu0 %v1337_v14 }
  0x49   :  { %554 = vmatpush.msrb.mxu2 %v1337_v14  ;;  %499 = vmatpush.msrb.mxu1 %v1337_v14 }
  0x4a   :  { %943 = vmatmul.msk.f32.gmra.mxu0 %vm285_vm3, %v197_v56  ;;  %593 = vmatpush.msrb.mxu3 %v1337_v14 }
  0x4b   :  { %461 = vmatpush.msrb.mxu0 %v1343_v15  ;;  %555 = vmatpush.msrb.mxu2 %v1343_v15 }
  0x4c   :  { %500 = vmatpush.msrb.mxu1 %v1343_v15  ;;  %594 = vmatpush.msrb.mxu3 %v1343_v15 }
  0x4d   :  { %462 = vmatpush.msrb.mxu0 %v1349_v16  ;;  %556 = vmatpush.msrb.mxu2 %v1349_v16 }
  0x4e   :  { %501 = vmatpush.msrb.mxu1 %v1349_v16  ;;  %595 = vmatpush.msrb.mxu3 %v1349_v16 }
  0x4f   :  { %463 = vmatpush.msrb.mxu0 %v1355_v17  ;;  %557 = vmatpush.msrb.mxu2 %v1355_v17 }
  0x50   :  { %502 = vmatpush.msrb.mxu1 %v1355_v17  ;;  %596 = vmatpush.msrb.mxu3 %v1355_v17 }
  0x51   :  { %464 = vmatpush.msrb.mxu0 %v1363_v19  ;;  %558 = vmatpush.msrb.mxu2 %v1363_v19 }
  0x52   :  { %503 = vmatpush.msrb.mxu1 %v1363_v19  ;;  %597 = vmatpush.msrb.mxu3 %v1363_v19 }
  0x53   :  { %465 = vmatpush.msrb.mxu0 %v1369_v20  ;;  %559 = vmatpush.msrb.mxu2 %v1369_v20 }
  0x54   :  { %504 = vmatpush.msrb.mxu1 %v1369_v20  ;;  %598 = vmatpush.msrb.mxu3 %v1369_v20 }
  0x55   :  { %466 = vmatpush.msrb.mxu0 %v1375_v22  ;;  %560 = vmatpush.msrb.mxu2 %v1375_v22 }
  0x56   :  { %505 = vmatpush.msrb.mxu1 %v1375_v22  ;;  %599 = vmatpush.msrb.mxu3 %v1375_v22 }
  0x58   :  { %817 = vmatpush.msra.mxu3 %v1285_v5 }
  0x5a   :  { %818 = vmatpush.msra.mxu3 %v1289_v6 }
  0x5c   :  { %819 = vmatpush.msra.mxu3 %v1291_v7 }
  0x5e   :  { %820 = vmatpush.msra.mxu3 %v1301_v8 }
  0x60   :  { %821 = vmatpush.msra.mxu3 %v1307_v9 }
  0x62   :  { %822 = vmatpush.msra.mxu3 %v1313_v10 }
  0x64   :  { %823 = vmatpush.msra.mxu3 %v1319_v11 }
  0x66   :  { %824 = vmatpush.msra.mxu3 %v1325_v12 }
  0x68   :  { %825 = vmatpush.msra.mxu3 %v1331_v13 }
  0x6a   :  { %826 = vmatpush.msra.mxu3 %v1337_v14 }
  0x6c   :  { %827 = vmatpush.msra.mxu3 %v1343_v15 }
  0x6e   :  { %828 = vmatpush.msra.mxu3 %v1349_v16 }
  0x70   :  { %829 = vmatpush.msra.mxu3 %v1355_v17 }
  0x72   :  { %830 = vmatpush.msra.mxu3 %v1363_v19 }
  0x74   :  { %831 = vmatpush.msra.mxu3 %v1369_v20 }
  0x76   :  { %832 = vmatpush.msra.mxu3 %v1375_v22 }
  0xaa   :  { %v1359_v18 = vpop.f32.mrf.mxu1 }
  0xaf   :  { %v311_v21 = vpop.f32.mrf.mxu0 }
  0xb1   :  { %v381_v23 = vpop.f32.mrf.mxu2 }
  0xb2   :  { %v343_v24 = vpop.f32.mrf.mxu1  ;;  %v426_v25 = vpop.f32.mrf.mxu3  ;;  %v393_v38 = vadd.f32 %v381_v23, %v311_v21 }
  0xb3   :  { %v442_v31 = vadd.f32 %v343_v24, %v1359_v18 }
  0xb4   :  { %v438_v44 = vadd.f32 %v426_v25, %v393_v38 }
  0xb7   :  { %v314_v26 = vpop.f32.mrf.mxu0 }
  0xb9   :  { %v384_v27 = vpop.f32.mrf.mxu2 }
  0xba   :  { %v346_v28 = vpop.f32.mrf.mxu1  ;;  %v429_v30 = vpop.f32.mrf.mxu3  ;;  %v394_v35 = vadd.f32 %v384_v27, %v314_v26 }
  0xbb   :  { %v443_v33 = vadd.f32 %v442_v31, %v346_v28 }
  0xbc   :  { %v439_v41 = vadd.f32 %v429_v30, %v394_v35 }
  0xbe   :  { %v536_v48 = vadd.f32 %v439_v41, %v438_v44 }
  0xbf   :  { %v317_v32 = vpop.f32.mrf.mxu0 }
  0xc1   :  { %v387_v34 = vpop.f32.mrf.mxu2 }
  0xc2   :  { %v349_v36 = vpop.f32.mrf.mxu1  ;;  %v432_v37 = vpop.f32.mrf.mxu3  ;;  %v395_v39 = vadd.f32 %v387_v34, %v317_v32 }
  0xc3   :  { %v444_v40 = vadd.f32 %v443_v33, %v349_v36 }
  0xc4   :  { %v440_v46 = vadd.f32 %v432_v37, %v395_v39 }
  0xc5   :  { %v445_v42 = vrot.slane %v444_v40, 4 }
  0xc6   :  { %v537_v54 = vadd.f32 %v536_v48, %v440_v46 }
  0xc7   :  { %v320_v43 = vpop.f32.mrf.mxu0  ;;  %v446_v45 = vadd.f32 %v445_v42, %v444_v40 }
  0xc9   :  { %v390_v47 = vpop.f32.mrf.mxu2  ;;  %v447_v49 = vrot.slane %v446_v45, 2 }
  0xca   :  { %v396_v51 = vadd.f32 %v390_v47, %v320_v43  ;;  %v435_v52 = vpop.f32.mrf.mxu3 }
  0xcb   :  { %v448_v53 = vadd.f32 %v447_v49, %v446_v45 }
  0xcc   :  { %v441_v55 = vadd.f32 %v435_v52, %v396_v51 }
  0xcd   :  { %v449_v58 = vrot.slane %v448_v53, 1 }
  0xce   :  { %v538_v56 = vadd.f32 %v537_v54, %v441_v55 }
  0xcf   :  { %v450_v60 = vadd.f32 %v449_v58, %v448_v53 }
  0xd0   :  { %v539_v59 = vrot.slane %v538_v56, 4 }
  0xd1   :  { %467 = vmatmul.f32.vlgmr.msrb.gmra.mxu0 %v450_v60 }
  0xd2   :  { %v540_v61 = vadd.f32 %v539_v59, %v538_v56 }
  0xd4   :  { %v541_v62 = vrot.slane %v540_v61, 2 }
  0xd6   :  { %v542_v63 = vadd.f32 %v541_v62, %v540_v61  ;;  %v647_v62 = vld [vmem:[#allocation8 + $0xf8] sm:$0xff] }
  0xd7   :  { %746 = vmatpush.msra.mxu1 %v647_v62  ;;  %v669_v62 = vld [vmem:[#allocation8 + $0x120] sm:$0xff] }
  0xd8   :  { %v543_v0 = vrot.slane %v542_v63, 1 }
  0xda   :  { %v544_v2 = vadd.f32 %v543_v0, %v542_v63  ;;  %v646_v63 = vld [vmem:[#allocation8 + $0xf0] sm:$0xff]  ;;  %v663_v0 = vld [vmem:[#allocation8 + $0x78] sm:$0xff] }
  0xdb   :  { %747 = vmatpush.msra.mxu1 %v646_v63  ;;  %717 = vmatpush.msra.mxu0 %v663_v0  ;;  %v634_v63 = vld [vmem:[#allocation8 + $0x90] sm:$0xff]  ;;  %v651_v0 = vld [vmem:[#allocation8 + $0x18] sm:$0xff] }
  0xdc   :  { %561 = vmatmul.f32.vlgmr.msrb.gmra.mxu2 %v544_v2  ;;  %v680_v2 = vld [vmem:[#allocation8 + $0x178] sm:$0xff] }
  0xdd   :  { %775 = vmatpush.msra.mxu2 %v680_v2  ;;  %v668_v2 = vld [vmem:[#allocation8 + $0x118] sm:$0xff] }
 0x14e   :  { %v468_v3 = vpop.f32.mrf.mxu0 }
 0x14f   :  { %v471_v4 = vmul.f32 0.001953125, %v468_v3  ;;  %v645_v3 = vld [vmem:[#allocation8 + $0xe8] sm:$0xff] }
 0x150   :  { %748 = vmatpush.msra.mxu1 %v645_v3  ;;  %v633_v3 = vld [vmem:[#allocation8 + $0x88] sm:$0xff] }
 0x151   :  { %v472_v21 = vperm.slane %v471_v4, 0  ;;  %v662_v4 = vld [vmem:[#allocation8 + $0x70] sm:$0xff] }
 0x152   :  { %718 = vmatpush.msra.mxu0 %v662_v4  ;;  %v650_v4 = vld [vmem:[#allocation8 + $0x10] sm:$0xff] }
 0x153   :  { %v1401_v23 = vsub.f32 %v1359_v18, %v472_v21  ;;  %v1403_v25 = vsub.f32 %v343_v24, %v472_v21  ;;  %v1405_v26 = vsub.f32 %v346_v28, %v472_v21  ;;  %v1407_v27 = vsub.f32 %v349_v36, %v472_v21  ;;  %v679_v21 = vld [vmem:[#allocation8 + $0x170] sm:$0xff] }
 0x154   :  { %776 = vmatpush.msra.mxu2 %v679_v21  ;;  %v667_v21 = vld [vmem:[#allocation8 + $0x110] sm:$0xff] }
 0x155   :  { %v477_v30 = vmul.f32 %v1401_v23, %v1401_v23  ;;  %v478_v31 = vmul.f32 %v1403_v25, %v1403_v25  ;;  %v479_v32 = vmul.f32 %v1405_v26, %v1405_v26  ;;  %v480_v33 = vmul.f32 %v1407_v27, %v1407_v27 }
 0x157   :  { %v481_v18 = vadd.f32 %v478_v31, %v477_v30  ;;  %v644_v30 = vld [vmem:[#allocation8 + $0xe0] sm:$0xff]  ;;  %v661_v31 = vld [vmem:[#allocation8 + $0x68] sm:$0xff] }
 0x158   :  { %749 = vmatpush.msra.mxu1 %v644_v30  ;;  %719 = vmatpush.msra.mxu0 %v661_v31  ;;  %v632_v30 = vld [vmem:[#allocation8 + $0x80] sm:$0xff]  ;;  %v649_v31 = vld [vmem:[#allocation8 + $0x8] sm:$0xff] }
 0x159   :  { %v482_v34 = vadd.f32 %v481_v18, %v479_v32  ;;  %v678_v32 = vld [vmem:[#allocation8 + $0x168] sm:$0xff]  ;;  %v660_v18 = vld [vmem:[#allocation8 + $0x60] sm:$0xff] }
 0x15a   :  { %777 = vmatpush.msra.mxu2 %v678_v32  ;;  %720 = vmatpush.msra.mxu0 %v660_v18  ;;  %v666_v18 = vld [vmem:[#allocation8 + $0x108] sm:$0xff] }
 0x15b   :  { %v483_v24 = vadd.f32 %v482_v34, %v480_v33  ;;  %v643_v33 = vld [vmem:[#allocation8 + $0xd8] sm:$0xff]  ;;  %v677_v34 = vld [vmem:[#allocation8 + $0x160] sm:$0xff] }
 0x15c   :  { %750 = vmatpush.msra.mxu1 %v643_v33  ;;  %778 = vmatpush.msra.mxu2 %v677_v34  ;;  %v648_v34 = vld [vmem:[#allocation8] sm:$0xff] }
 0x15d   :  { %v484_v35 = vrot.slane %v483_v24, 4 }
 0x15f   :  { %v562_v28 = vpop.f32.mrf.mxu2  ;;  %v485_v36 = vadd.f32 %v484_v35, %v483_v24  ;;  %v642_v24 = vld [vmem:[#allocation8 + $0xd0] sm:$0xff]  ;;  %v659_v35 = vld [vmem:[#allocation8 + $0x58] sm:$0xff] }
 0x160   :  { %v565_v37 = vmul.f32 0.001953125, %v562_v28  ;;  %751 = vmatpush.msra.mxu1 %v642_v24  ;;  %v676_v28 = vld [vmem:[#allocation8 + $0x158] sm:$0xff]  ;;  %721 = vmatpush.msra.mxu0 %v659_v35  ;;  %v665_v24 = vld [vmem:[#allocation8 + $0x100] sm:$0xff] }
 0x161   :  { %v486_v39 = vrot.slane %v485_v36, 2  ;;  %779 = vmatpush.msra.mxu2 %v676_v28 }
 0x162   :  { %v566_v38 = vperm.slane %v565_v37, 0  ;;  %v641_v37 = vld [vmem:[#allocation8 + $0xc8] sm:$0xff] }
 0x163   :  { %v487_v45 = vadd.f32 %v486_v39, %v485_v36  ;;  %752 = vmatpush.msra.mxu1 %v641_v37  ;;  %v658_v36 = vld [vmem:[#allocation8 + $0x50] sm:$0xff]  ;;  %v640_v39 = vld [vmem:[#allocation8 + $0xc0] sm:$0xff] }
 0x164   :  { %v1417_v40 = vsub.f32 %v438_v44, %v566_v38  ;;  %v1419_v42 = vsub.f32 %v439_v41, %v566_v38  ;;  %v1421_v43 = vsub.f32 %v440_v46, %v566_v38  ;;  %v1423_v47 = vsub.f32 %v441_v55, %v566_v38  ;;  %v675_v38 = vld [vmem:[#allocation8 + $0x150] sm:$0xff]  ;;  %722 = vmatpush.msra.mxu0 %v658_v36 }
 0x165   :  { %v488_v51 = vrot.slane %v487_v45, 1  ;;  %780 = vmatpush.msra.mxu2 %v675_v38  ;;  %753 = vmatpush.msra.mxu1 %v640_v39 }
 0x166   :  { %v571_v48 = vmul.f32 %v1417_v40, %v1417_v40  ;;  %v572_v49 = vmul.f32 %v1419_v42, %v1419_v42  ;;  %v573_v52 = vmul.f32 %v1421_v43, %v1421_v43  ;;  %v574_v41 = vmul.f32 %v1423_v47, %v1423_v47 }
 0x167   :  { %v489_v44 = vadd.f32 %v488_v51, %v487_v45  ;;  %v657_v45 = vld [vmem:[#allocation8 + $0x48] sm:$0xff]  ;;  %v656_v51 = vld [vmem:[#allocation8 + $0x40] sm:$0xff] }
 0x168   :  { %v575_v53 = vadd.f32 %v572_v49, %v571_v48  ;;  %v674_v48 = vld [vmem:[#allocation8 + $0x148] sm:$0xff]  ;;  %723 = vmatpush.msra.mxu0 %v657_v45  ;;  %v639_v49 = vld [vmem:[#allocation8 + $0xb8] sm:$0xff] }
 0x169   :  { %506 = vmatmul.f32.vlgmr.msrb.gmra.mxu1 %v489_v44  ;;  %781 = vmatpush.msra.mxu2 %v674_v48  ;;  %v655_v44 = vld [vmem:[#allocation8 + $0x38] sm:$0xff] }
 0x16a   :  { %v576_v46 = vadd.f32 %v575_v53, %v573_v52  ;;  %754 = vmatpush.msra.mxu1 %v639_v49  ;;  %v673_v52 = vld [vmem:[#allocation8 + $0x140] sm:$0xff]  ;;  %724 = vmatpush.msra.mxu0 %v656_v51  ;;  %v638_v53 = vld [vmem:[#allocation8 + $0xb0] sm:$0xff] }
 0x16b   :  { %782 = vmatpush.msra.mxu2 %v673_v52 }
 0x16c   :  { %v577_v54 = vadd.f32 %v576_v46, %v574_v41  ;;  %755 = vmatpush.msra.mxu1 %v638_v53  ;;  %v672_v41 = vld [vmem:[#allocation8 + $0x138] sm:$0xff]  ;;  %725 = vmatpush.msra.mxu0 %v655_v44  ;;  %v637_v46 = vld [vmem:[#allocation8 + $0xa8] sm:$0xff] }
 0x16d   :  { %783 = vmatpush.msra.mxu2 %v672_v41 }
 0x16e   :  { %v578_v55 = vrot.slane %v577_v54, 4  ;;  %756 = vmatpush.msra.mxu1 %v637_v46 }
 0x170   :  { %v579_v56 = vadd.f32 %v578_v55, %v577_v54  ;;  %v654_v54 = vld [vmem:[#allocation8 + $0x30] sm:$0xff] }
 0x171   :  { %v671_v55 = vld [vmem:[#allocation8 + $0x130] sm:$0xff]  ;;  %726 = vmatpush.msra.mxu0 %v654_v54 }
 0x172   :  { %v580_v58 = vrot.slane %v579_v56, 2  ;;  %784 = vmatpush.msra.mxu2 %v671_v55 }
 0x174   :  { %v581_v59 = vadd.f32 %v580_v58, %v579_v56  ;;  %v636_v56 = vld [vmem:[#allocation8 + $0xa0] sm:$0xff]  ;;  %v653_v58 = vld [vmem:[#allocation8 + $0x28] sm:$0xff] }
 0x175   :  { %757 = vmatpush.msra.mxu1 %v636_v56  ;;  %727 = vmatpush.msra.mxu0 %v653_v58 }
 0x176   :  { %v582_v60 = vrot.slane %v581_v59, 1 }
 0x178   :  { %v583_v61 = vadd.f32 %v582_v60, %v581_v59  ;;  %v670_v59 = vld [vmem:[#allocation8 + $0x128] sm:$0xff]  ;;  %v635_v60 = vld [vmem:[#allocation8 + $0x98] sm:$0xff] }
 0x179   :  { %785 = vmatpush.msra.mxu2 %v670_v59  ;;  %758 = vmatpush.msra.mxu1 %v635_v60 }
 0x17a   :  { %600 = vmatmul.f32.vlgmr.msrb.gmra.mxu3 %v583_v61  ;;  %v652_v61 = vld [vmem:[#allocation8 + $0x20] sm:$0xff] }
 0x17b   :  { %728 = vmatpush.msra.mxu0 %v652_v61  ;;  %786 = vmatpush.msra.mxu2 %v669_v62 }
 0x17c   :  { %759 = vmatpush.msra.mxu1 %v634_v63 }
 0x17d   :  { %729 = vmatpush.msra.mxu0 %v651_v0  ;;  %787 = vmatpush.msra.mxu2 %v668_v2 }
 0x17e   :  { %760 = vmatpush.msra.mxu1 %v633_v3 }
 0x17f   :  { %730 = vmatpush.msra.mxu0 %v650_v4  ;;  %788 = vmatpush.msra.mxu2 %v667_v21 }
 0x180   :  { %761 = vmatpush.msra.mxu1 %v632_v30 }
 0x181   :  { %731 = vmatpush.msra.mxu0 %v649_v31  ;;  %789 = vmatpush.msra.mxu2 %v666_v18 }
 0x183   :  { %732 = vmatpush.msra.mxu0 %v648_v34  ;;  %790 = vmatpush.msra.mxu2 %v665_v24 }
 0x185   :  { %856 = vmatpush.msrb.mxu0 %v1285_v5 }
 0x187   :  { %857 = vmatpush.msrb.mxu0 %v1289_v6  ;;  %v1442_v6 = vld [vmem:[#allocation11] sm:$0x3f] }
 0x189   :  { %858 = vmatpush.msrb.mxu0 %v1291_v7 }
 0x18b   :  { %859 = vmatpush.msrb.mxu0 %v1301_v8 }
 0x18d   :  { %860 = vmatpush.msrb.mxu0 %v1307_v9 }
 0x18f   :  { %861 = vmatpush.msrb.mxu0 %v1313_v10  ;;  %v622_v10 = vperm.slane %v1442_v6, 1 }
 0x191   :  { %862 = vmatpush.msrb.mxu0 %v1319_v11 }
 0x193   :  { %863 = vmatpush.msrb.mxu0 %v1325_v12 }
 0x195   :  { %864 = vmatpush.msrb.mxu0 %v1331_v13 }
 0x197   :  { %865 = vmatpush.msrb.mxu0 %v1337_v14 }
 0x199   :  { %866 = vmatpush.msrb.mxu0 %v1343_v15 }
 0x19b   :  { %867 = vmatpush.msrb.mxu0 %v1349_v16 }
 0x19d   :  { %868 = vmatpush.msrb.mxu0 %v1355_v17 }
 0x19f   :  { %869 = vmatpush.msrb.mxu0 %v1363_v19 }
 0x1a1   :  { %870 = vmatpush.msrb.mxu0 %v1369_v20 }
 0x1a3   :  { %871 = vmatpush.msrb.mxu0 %v1375_v22 }
 0x1e6   :  { %v507_v50 = vpop.f32.mrf.mxu1 }
 0x1fd   :  { %v601_v32 = vpop.f32.mrf.mxu3 }
 0x1fe   :  { %v604_v33 = vmul.f32 0.001953125, %v601_v32 }
 0x200   :  { %v605_v35 = vadd.f32 1e-05, %v604_v33 }
 0x202   :  { %971 = vrsqrt.f32 %v605_v35  ;;  %vm612_vm8 = vweird.f32 %v605_v35 }
 0x208   :  { %v972_v28 = vpop.eup %971 }
 0x209   :  { %v607_v37 = vmul.f32 %v972_v28, %v605_v35  ;;  %vm613_vm7 = vweird.f32 %v972_v28 }
 0x20a   :  { %vm614_vm9 = vmor %vm612_vm8, %vm613_vm7 }
 0x20b   :  { %v608_v36 = vmul.f32 %v972_v28, %v607_v37 }
 0x20d   :  { %v609_v38 = vmul.f32 0.5, %v608_v36 }
 0x20f   :  { %v610_v39 = vsub.f32 1.5, %v609_v38 }
 0x211   :  { %v611_v5 = vmul.f32 %v972_v28, %v610_v39 }
 0x213   :  { %v615_v7 = vsel %vm614_vm9, %v972_v28, %v611_v5 }
 0x214   :  { %v616_v8 = vmul.f32 %v615_v7, %v1442_v6 }
 0x216   :  { %v617_v9 = vperm.slane %v616_v8, 0 }
 0x218   :  { %v618_v11 = vmul.f32 %v617_v9, %v1417_v40  ;;  %v619_v12 = vmul.f32 %v617_v9, %v1419_v42  ;;  %v620_v45 = vmul.f32 %v617_v9, %v1421_v43  ;;  %v621_v43 = vmul.f32 %v617_v9, %v1423_v47 }
 0x21a   :  { %v623_v13 = vadd.f32 %v622_v10, %v618_v11  ;;  %v624_v48 = vadd.f32 %v622_v10, %v619_v12  ;;  %v625_v14 = vadd.f32 %v622_v10, %v620_v45  ;;  %v626_v44 = vadd.f32 %v622_v10, %v621_v43 }
 0x21c   :  { %v627_v49 = vmax.f32 %v623_v13, 0.0  ;;  %v628_v51 = vmax.f32 %v624_v48, 0.0  ;;  %v629_v16 = vmax.f32 %v625_v14, 0.0  ;;  %v630_v46 = vmax.f32 %v626_v44, 0.0 }
 0x21e   :  { %762 = vmatmul.f32.vlgmr.msra.gmra.mxu1 %v627_v49  ;;  %v685_v52 = vrot.slane %v627_v49, 7  ;;  %v701_v15 = vrot.slane %v627_v49, 1  ;;  %v702_v53 = vrot.slane %v628_v51, 1  ;;  %v686_v17 = vrot.slane %v628_v51, 7 }
 0x21f   :  { %v704_v19 = vrot.slane %v629_v16, 1  ;;  %v688_v47 = vrot.slane %v629_v16, 7  ;;  %v706_v54 = vrot.slane %v630_v46, 1  ;;  %v690_v55 = vrot.slane %v630_v46, 7 }
 0x220   :  { %v696_v40 = vsel %vm235_vm0, 0.0, %v685_v52  ;;  %v703_v42 = vsel %vm260_vm2, %v701_v15, %v702_v53  ;;  %v687_v41 = vsel %vm235_vm0, %v685_v52, %v686_v17 }
 0x221   :  { %956 = vmatmul.msk.f32.vlgmr.msra.gmra.mxu0 %vm1234_vm1, %v696_v40  ;;  %791 = vmatmul.f32.vlgmr.msra.gmra.mxu2 %v703_v42  ;;  %v705_v20 = vsel %vm260_vm2, %v702_v53, %v704_v19  ;;  %v689_v29 = vsel %vm235_vm0, %v686_v17, %v688_v47  ;;  %v707_v22 = vsel %vm260_vm2, %v704_v19, %v706_v54  ;;  %v712_v58 = vsel %vm260_vm2, %v706_v54, 0.0 }
 0x222   :  { %v691_v56 = vsel %vm235_vm0, %v688_v47, %v690_v55 }
 0x226   :  { %765 = vmatmul.f32.gmra.mxu1 %v628_v51 }
 0x229   :  { %736 = vmatmul.f32.gmra.mxu0 %v687_v41  ;;  %958 = vmatmul.msk.f32.gmra.mxu2 %vm1248_vm4, %v705_v20  ;;  %v510_v20 = vmul.f32 0.001953125, %v507_v50 }
 0x22e   :  { %768 = vmatmul.f32.gmra.mxu1 %v629_v16 }
 0x231   :  { %957 = vmatmul.msk.f32.gmra.mxu0 %vm1259_vm5, %v689_v29  ;;  %797 = vmatmul.f32.gmra.mxu2 %v707_v22 }
 0x236   :  { %771 = vmatmul.f32.gmra.mxu1 %v630_v46  ;;  %v511_v46 = vadd.f32 1e-05, %v510_v20 }
 0x238   :  { %973 = vrsqrt.f32 %v511_v46  ;;  %vm518_vm11 = vweird.f32 %v511_v46 }
 0x239   :  { %742 = vmatmul.f32.gmra.mxu0 %v691_v56  ;;  %959 = vmatmul.msk.f32.gmra.mxu2 %vm1273_vm6, %v712_v58 }
 0x23e   :  { %v974_v47 = vpop.eup %973 }
 0x23f   :  { %v513_v54 = vmul.f32 %v974_v47, %v511_v46  ;;  %vm519_vm10 = vweird.f32 %v974_v47 }
 0x240   :  { %vm520_vm12 = vmor %vm518_vm11, %vm519_vm10 }
 0x241   :  { %v514_v29 = vmul.f32 %v974_v47, %v513_v54 }
 0x243   :  { %v515_v55 = vmul.f32 0.5, %v514_v29 }
 0x29b   :  { %v763_v59 = vpop.f32.mrf.mxu1 }
 0x29e   :  { %v734_v60 = vpop.f32.mrf.mxu0 }
 0x29f   :  { %v764_v21 = vadd.f32 %v763_v59, %v734_v60  ;;  %v516_v59 = vsub.f32 1.5, %v515_v55 }
 0x2a1   :  { %v517_v60 = vmul.f32 %v974_v47, %v516_v59 }
 0x2a3   :  { %v766_v62 = vpop.f32.mrf.mxu1 }
 0x2a4   :  { %v792_v61 = vpop.f32.mrf.mxu2 }
 0x2a5   :  { %v804_v33 = vadd.f32 %v792_v61, %v764_v21 }
 0x2a6   :  { %v737_v63 = vpop.f32.mrf.mxu0 }
 0x2a7   :  { %v767_v4 = vadd.f32 %v766_v62, %v737_v63  ;;  %v521_v63 = vsel %vm520_vm12, %v974_v47, %v517_v60 }
 0x2a8   :  { %v523_v50 = vrot.slane %v521_v63, 4 }
 0x2ab   :  { %v769_v2 = vpop.f32.mrf.mxu1 }
 0x2ac   :  { %v795_v0 = vpop.f32.mrf.mxu2 }
 0x2ad   :  { %v805_v30 = vadd.f32 %v795_v0, %v767_v4 }
 0x2ae   :  { %v740_v57 = vpop.f32.mrf.mxu0 }
 0x2af   :  { %v770_v31 = vadd.f32 %v769_v2, %v740_v57  ;;  %v808_v1 = vadd.f32 %v805_v30, %v804_v33 }
 0x2b3   :  { %v772_v34 = vpop.f32.mrf.mxu1 }
 0x2b4   :  { %v798_v3 = vpop.f32.mrf.mxu2 }
 0x2b5   :  { %v806_v18 = vadd.f32 %v798_v3, %v770_v31  ;;  %v525_v3 = vmul.f32 %v523_v50, %v1442_v6 }
 0x2b6   :  { %v743_v32 = vpop.f32.mrf.mxu0 }
 0x2b7   :  { %v773_v24 = vadd.f32 %v772_v34, %v743_v32  ;;  %v809_v28 = vadd.f32 %v808_v1, %v806_v18  ;;  %v526_v31 = vperm.slane %v525_v3, 4  ;;  %v897_v34 = vperm.slane %v1442_v6, 3 }
 0x2b9   :  { %v527_v1 = vmul.f32 %v526_v31, %v1401_v23 }
 0x2bc   :  { %v801_v35 = vpop.f32.mrf.mxu2 }
 0x2bd   :  { %v807_v37 = vadd.f32 %v801_v35, %v773_v24  ;;  %v528_v24 = vmul.f32 %v526_v31, %v1403_v25  ;;  %v529_v35 = vmul.f32 %v526_v31, %v1405_v26 }
 0x2bf   :  { %v810_v36 = vadd.f32 %v809_v28, %v807_v37  ;;  %v530_v28 = vmul.f32 %v526_v31, %v1407_v27 }
 0x2c1   :  { %v811_v38 = vrot.slane %v810_v36, 4 }
 0x2c3   :  { %v812_v39 = vadd.f32 %v811_v38, %v810_v36 }
 0x2c5   :  { %v813_v5 = vrot.slane %v812_v39, 2 }
 0x2c7   :  { %v814_v7 = vadd.f32 %v813_v5, %v812_v39 }
 0x2c9   :  { %v815_v8 = vrot.slane %v814_v7, 1 }
 0x2cb   :  { %v816_v9 = vadd.f32 %v815_v8, %v814_v7 }
 0x2cd   :  { %833 = vmatmul.f32.vlgmr.msra.gmra.mxu3 %v816_v9 }
 0x350   :  { %v834_v10 = vpop.f32.mrf.mxu3 }
 0x351   :  { %v837_v11 = vmul.f32 0.001953125, %v834_v10 }
 0x353   :  { %v838_v12 = vperm.slane %v837_v11, 0 }
 0x355   :  { %v839_v45 = vsub.f32 %v804_v33, %v838_v12  ;;  %v840_v13 = vsub.f32 %v805_v30, %v838_v12  ;;  %v841_v48 = vsub.f32 %v806_v18, %v838_v12  ;;  %v842_v49 = vsub.f32 %v807_v37, %v838_v12 }
 0x356   :  { %v531_v18 = vperm.slane %v1442_v6, 5 }
 0x357   :  { %v843_v51 = vmul.f32 %v839_v45, %v839_v45  ;;  %v844_v14 = vmul.f32 %v840_v13, %v840_v13  ;;  %v845_v52 = vmul.f32 %v841_v48, %v841_v48  ;;  %v846_v53 = vmul.f32 %v842_v49, %v842_v49 }
 0x358   :  { %v532_v10 = vadd.f32 %v531_v18, %v527_v1  ;;  %v533_v11 = vadd.f32 %v531_v18, %v528_v24  ;;  %v534_v12 = vadd.f32 %v531_v18, %v529_v35 }
 0x359   :  { %v847_v15 = vadd.f32 %v844_v14, %v843_v51 }
 0x35b   :  { %v848_v40 = vadd.f32 %v847_v15, %v845_v52 }
 0x35d   :  { %v849_v42 = vadd.f32 %v848_v40, %v846_v53 }
 0x35f   :  { %v850_v16 = vrot.slane %v849_v42, 4 }
 0x361   :  { %v851_v43 = vadd.f32 %v850_v16, %v849_v42 }
 0x363   :  { %v852_v17 = vrot.slane %v851_v43, 2 }
 0x365   :  { %v853_v19 = vadd.f32 %v852_v17, %v851_v43 }
 0x367   :  { %v854_v44 = vrot.slane %v853_v19, 1 }
 0x369   :  { %v855_v41 = vadd.f32 %v854_v44, %v853_v19 }
 0x36b   :  { %872 = vmatmul.f32.vlgmr.msrb.gmra.mxu0 %v855_v41 }
 0x3e8   :  { %v873_v22 = vpop.f32.mrf.mxu0 }
 0x3e9   :  { %v876_v56 = vmul.f32 0.001953125, %v873_v22 }
 0x3eb   :  { %v877_v58 = vadd.f32 1e-05, %v876_v56 }
 0x3ed   :  { %975 = vrsqrt.f32 %v877_v58  ;;  %vm884_vm14 = vweird.f32 %v877_v58 }
 0x3f3   :  { %v976_v61 = vpop.eup %975 }
 0x3f4   :  { %v879_v62 = vmul.f32 %v976_v61, %v877_v58  ;;  %vm885_vm13 = vweird.f32 %v976_v61 }
 0x3f5   :  { %vm886_vm15 = vmor %vm884_vm14, %vm885_vm13 }
 0x3f6   :  { %v880_v0 = vmul.f32 %v976_v61, %v879_v62 }
 0x3f8   :  { %v881_v57 = vmul.f32 0.5, %v880_v0 }
 0x3fa   :  { %v882_v2 = vsub.f32 1.5, %v881_v57 }
 0x3fc   :  { %v883_v4 = vmul.f32 %v976_v61, %v882_v2 }
 0x3fe   :  { %v887_v21 = vsel %vm886_vm15, %v976_v61, %v883_v4 }
 0x3ff   :  { %v889_v30 = vrot.slane %v887_v21, 6 }
 0x401   :  { %v891_v32 = vmul.f32 %v889_v30, %v1442_v6  ;;  %v535_v6 = vadd.f32 %v531_v18, %v530_v28 }
 0x403   :  { %v892_v33 = vperm.slane %v891_v32, 2 }
 0x405   :  { %v893_v37 = vmul.f32 %v892_v33, %v839_v45  ;;  %v894_v36 = vmul.f32 %v892_v33, %v840_v13  ;;  %v895_v38 = vmul.f32 %v892_v33, %v841_v48  ;;  %v896_v39 = vmul.f32 %v892_v33, %v842_v49 }
 0x407   :  { %v898_v5 = vadd.f32 %v897_v34, %v893_v37  ;;  %v899_v7 = vadd.f32 %v897_v34, %v894_v36  ;;  %v900_v8 = vadd.f32 %v897_v34, %v895_v38  ;;  %v901_v9 = vadd.f32 %v897_v34, %v896_v39 }
 0x409   :  { %v902_v51 = vmax.f32 %v898_v5, 0.0  ;;  %v903_v23 = vmax.f32 %v899_v7, 0.0  ;;  %v904_v14 = vmax.f32 %v900_v8, 0.0  ;;  %v905_v25 = vmax.f32 %v901_v9, 0.0 }
 0x40b   :  { %v906_v52 = vadd.f32 %v902_v51, %v532_v10  ;;  %v907_v26 = vadd.f32 %v903_v23, %v533_v11  ;;  %v908_v15 = vadd.f32 %v904_v14, %v534_v12  ;;  %v909_v27 = vadd.f32 %v905_v25, %v535_v6 }
 0x40d   :  { %v910_v45 = vmax.f32 %v906_v52, 0.0  ;;  %v911_v13 = vmax.f32 %v907_v26, 0.0  ;;  %v912_v48 = vmax.f32 %v908_v15, 0.0  ;;  %v913_v49 = vmax.f32 %v909_v27, 0.0 }
 0x40f   :  { %914 = vst [vmem:[#allocation13] sm:$0xff] %v910_v45 }
 0x410   :  { %915 = vst [vmem:[#allocation13 + $0x8] sm:$0xff] %v911_v13 }
 0x411   :  { %916 = vst [vmem:[#allocation13 + $0x10] sm:$0xff] %v912_v48 }
 0x412   :  { %917 = vst [vmem:[#allocation13 + $0x18] sm:$0xff] %v913_v49 }
 0x413   :  { %930 = dma.vmem_to_hbm [thread:$0]  %s923_s5, 512, %s925_s7, [#allocation4], %s1156_s29, %s1156_s29, %s1157_s30  }
 0x414   :  { %1153 = dma.done.wait [#allocation4], 512  }
 0x415   :  { %1154 = vsyncadd [#allocation4], 4294966784 }
 0x416   :  { %935 = vsyncpa [#allocation3], 1 }
 0x417   :  { %936 = vsyncpa [#allocation6], 1 }
 0x418   :  { %937 = vsyncpa [#allocation9], 1 }
 0x419   :  { %938 = vsyncpa [#allocation12], 1 }
 0x41a   :  { %939 = vsyncpa [#allocation4], 1 }

</bundles_post_ra>
